<compile_context>
chip_gen: v7x
topology: tpu7x:2x2x1
jax: 0.10.0
libtpu: 0.0.40
codegen_flags: <defaults>
</compile_context>

<pallas_src>
import functools

import jax
import jax.numpy as jnp
from jax.experimental import pallas as pl
from jax.experimental.pallas import tpu as pltpu


# --------------------------------------------------------------------------- #
# Helpers
# --------------------------------------------------------------------------- #
def _round_up(x, m):
    return ((x + m - 1) // m) * m


def _vmem_capacity_bytes():
    """Per-core VMEM capacity; conservative fallback if the query fails."""
    try:
        return int(pltpu.get_tpu_info().vmem_capacity_bytes)
    except Exception:
        return 64 << 20  # assume v7x-sized VMEM (safe everywhere)


def _pick_k_tile(c_in, target=512):
    """Contraction (C_in) tile. Only tile K for large channel counts, and the
    tile must divide C_in exactly (a clamped/padded contraction block would
    feed garbage into the accumulator)."""
    if c_in <= 1024:
        return c_in
    for cand in (target, 256, 128):
        if c_in % cand == 0:
            return cand
    # TODO(synk): zero-pad C_in in the wrapper for awkward channel counts.
    return c_in


def _pick_pixel_tile(hw, c_out, tk, x_bytes, out_bytes, tile_budget):
    """Largest lane (pixel) tile that fits the VMEM budget with double-buffered
    x/out tiles plus the f32 accumulator, rounded down to a multiple of 128."""
    per_col = 2 * tk * x_bytes + 2 * c_out * out_bytes + c_out * 4
    tm = max(tile_budget // per_col, 128)
    tm = (tm // 128) * 128
    tm = min(tm, _round_up(hw, 128))
    return max(tm, 128)


def _pick_batch_block(n, hw_tiles, step_x_bytes, tile_bytes_per_batch,
                      tile_budget, target_bytes=512 << 10, min_steps=2):
    """Block several batch elements per grid step when one element's tile is
    only a few KiB (the ~0.35us/step grid overhead dominates), but keep at
    least `min_steps` parallel grid steps so both v7x TensorCores get work."""
    best = 1
    for bn in range(1, n + 1):
        if n % bn:
            continue
        if (n // bn) * hw_tiles < min_steps:
            break
        if bn * tile_bytes_per_batch > tile_budget:
            break
        best = bn
        if bn * step_x_bytes >= target_bytes:
            break
    return best


# --------------------------------------------------------------------------- #
# Kernel
# --------------------------------------------------------------------------- #
def _linear_kernel(w_ref, b_ref, x_ref, o_ref, *scratch, bn, nk, exact_f32):
    # w_ref: (C_out, tk)      resident (nk==1) or k-indexed
    # b_ref: (C_out, 1)       resident
    # x_ref: (bn, tk, tm)     pixels on the lane axis -> full-width loads
    # o_ref: (bn, C_out, tm)  lane-dense, unmasked stores
    dot_kwargs = dict(preferred_element_type=jnp.float32)
    if exact_f32:
        # Match PyTorch f32 Conv2d numerics (default TPU matmul precision
        # would otherwise drop the f32 dot to bf16 passes).
        dot_kwargs["precision"] = jax.lax.Precision.HIGHEST

    w = w_ref[...]

    if nk == 1:
        # Single contraction step: fuse bias-add + store, no accumulator.
        b_vec = b_ref[...]                                   # (C_out, 1)
        for b in range(bn):                                  # static unroll
            acc = jnp.dot(w, x_ref[b], **dot_kwargs)
            o_ref[b] = (acc + b_vec).astype(o_ref.dtype)
        return

    # K-tiled path: f32 accumulator resident across the (arbitrary) k axis.
    acc_ref = scratch[0]
    k = pl.program_id(2)

    @pl.when(k == 0)
    def _init():
        acc_ref[...] = jnp.zeros_like(acc_ref)

    for b in range(bn):                                      # static unroll
        acc_ref[b] += jnp.dot(w, x_ref[b], **dot_kwargs)

    @pl.when(k == nk - 1)
    def _finalize():
        o_ref[...] = (acc_ref[...] + b_ref[...][None, :, :]).astype(o_ref.dtype)


# --------------------------------------------------------------------------- #
# pallas_call wrapper
# --------------------------------------------------------------------------- #
@functools.partial(
    jax.jit,
    static_argnames=("tm", "tk", "bn", "hw_pad", "bf16_matmul",
                     "single_buffer_resident", "vmem_limit"))
def _linear_impl(w_mat, b_mat, x3, *, tm, tk, bn, hw_pad, bf16_matmul,
                 single_buffer_resident, vmem_limit):
    N, C_in, HW = x3.shape
    C_out = w_mat.shape[0]
    out_dtype = x3.dtype
    nk = C_in // tk

    compute_dtype = jnp.bfloat16 if bf16_matmul else x3.dtype
    w_mat = w_mat.astype(compute_dtype)
    x3 = x3.astype(compute_dtype)
    b_mat = b_mat.astype(jnp.float32)

    if hw_pad != HW:
        # Pad pixels so every tile is fully in-bounds -> unmasked, lane-dense
        # stores.  Pixels are independent, so padded columns are just dropped.
        x3 = jnp.pad(x3, ((0, 0), (0, 0), (0, hw_pad - HW)))

    grid = (N // bn, hw_pad // tm, nk)

    resident_kw = {}
    if single_buffer_resident:
        # Constant index_map -> the block never changes: one VMEM buffer is
        # enough; the reclaimed VMEM goes straight into a larger pixel tile.
        resident_kw = dict(pipeline_mode=pl.Buffered(1))

    if nk == 1:
        w_spec = pl.BlockSpec((C_out, tk), lambda b, j, k: (0, 0), **resident_kw)
    else:
        w_spec = pl.BlockSpec((C_out, tk), lambda b, j, k: (0, k))
    b_spec = pl.BlockSpec((C_out, 1), lambda b, j, k: (0, 0), **resident_kw)
    x_spec = pl.BlockSpec((bn, tk, tm), lambda b, j, k: (b, k, j))
    o_spec = pl.BlockSpec((bn, C_out, tm), lambda b, j, k: (b, 0, j))

    scratch = [] if nk == 1 else [pltpu.VMEM((bn, C_out, tm), jnp.float32)]

    kernel = functools.partial(_linear_kernel, bn=bn, nk=nk,
                               exact_f32=not bf16_matmul)

    out3 = pl.pallas_call(
        kernel,
        out_shape=jax.ShapeDtypeStruct((N, C_out, hw_pad), out_dtype),
        grid_spec=pltpu.PrefetchScalarGridSpec(
            num_scalar_prefetch=0,
            grid=grid,
            in_specs=[w_spec, b_spec, x_spec],
            out_specs=o_spec,
            scratch_shapes=scratch),
        compiler_params=pltpu.CompilerParams(
            dimension_semantics=("parallel", "parallel", "arbitrary"),
            vmem_limit_bytes=vmem_limit),
    )(w_mat, b_mat, x3)

    if hw_pad != HW:
        out3 = out3[:, :, :HW]
    return out3


def linear_1x1_conv(x_nchw, weight, bias, *, bf16_matmul=True):
    """PyTorch `linear` module (1x1 Conv2d + bias) as a Pallas TPU kernel.

    x_nchw : (N, C_in, H, W)
    weight : (C_out, C_in, 1, 1)   (PyTorch Conv2d layout)
    bias   : (C_out,)
    returns: (N, C_out, H, W) in x's dtype.

    bf16_matmul=True feeds the MXU bf16 operands (f32 accumulation) and halves
    HBM bytes for w/x; set False for exact f32 (PyTorch) numerics.
    """
    N, C_in, H, W = x_nchw.shape
    C_out = weight.shape[0]
    HW = H * W

    compute_dtype = jnp.bfloat16 if bf16_matmul else x_nchw.dtype
    x_bytes = jnp.dtype(compute_dtype).itemsize
    out_bytes = jnp.dtype(x_nchw.dtype).itemsize

    # ---- generation-aware VMEM policy (v5e/v6e: 128 MiB, v7x: 64 MiB) ------
    vmem_cap = _vmem_capacity_bytes()
    vmem_limit = min(int(0.7 * vmem_cap), 100 << 20)   # ~44 MiB v7x, ~90 MiB v5e/v6e
    w_resident_bytes = 2 * C_out * C_in * x_bytes      # budget 2 copies in case
                                                       # single-buffering falls back
    tile_budget = max((vmem_limit * 3) // 4 - w_resident_bytes, 1 << 20)

    # ---- tiling -------------------------------------------------------------
    tk = _pick_k_tile(C_in)
    tm = _pick_pixel_tile(HW, C_out, tk, x_bytes, out_bytes, tile_budget)

    # v7x has 2 TensorCores: guarantee >= 2 parallel grid steps when possible.
    while N * pl.cdiv(_round_up(HW, 128), tm) < 2 and tm > 128:
        tm = max(((tm // 2) // 128) * 128, 128)

    hw_pad = _round_up(HW, tm)
    hw_tiles = hw_pad // tm
    tile_bytes_per_batch = tm * (2 * tk * x_bytes + 2 * C_out * out_bytes + C_out * 4)
    bn = _pick_batch_block(N, hw_tiles, tk * tm * x_bytes,
                           tile_bytes_per_batch, tile_budget)

    # Free reshapes only - no transposes (no extra HBM traffic).
    w_mat = weight[:, :, 0, 0]          # (C_out, C_in)
    b_mat = bias.reshape(C_out, 1)      # (C_out, 1) -> broadcast over lanes
    x3 = x_nchw.reshape(N, C_in, HW)    # (N, C_in, HW)

    call = functools.partial(
        _linear_impl, w_mat, b_mat, x3,
        tm=tm, tk=tk, bn=bn, hw_pad=hw_pad,
        bf16_matmul=bf16_matmul, vmem_limit=vmem_limit)

    try:
        out3 = call(single_buffer_resident=True)
    except Exception:
        # pl.Buffered(1) (single-buffered resident weight/bias) not supported
        # by this jax/Mosaic build -> fall back to default double-buffering.
        out3 = call(single_buffer_resident=False)

    return out3.reshape(N, C_out, H, W)  # free reshape, already NCHW


# --------------------------------------------------------------------------- #
# Demo / correctness check
# --------------------------------------------------------------------------- #
if __name__ == "__main__":
    key = jax.random.PRNGKey(0)
    kx, kw, kb = jax.random.split(key, 3)

    # Small shapes consistent with the module: batch=2, c_in=4, c_out=8, 16x16.
    N, C_in, C_out, H, W = 2, 4, 8, 16, 16

    x = jax.random.normal(kx, (N, C_in, H, W), dtype=jnp.float32)
    weight = jax.random.normal(kw, (C_out, C_in, 1, 1), dtype=jnp.float32) * 0.1
    bias = jax.random.normal(kb, (C_out,), dtype=jnp.float32) * 0.1

    # Reference (plain JAX 1x1 conv semantics, full f32 precision).
    ref = jnp.einsum("nchw,oc->nohw", x, weight[:, :, 0, 0],
                     precision=jax.lax.Precision.HIGHEST) \
        + bias[None, :, None, None]

    # Exact-f32 path (matches the PyTorch Conv2d numerics).
    out_f32 = jax.block_until_ready(linear_1x1_conv(x, weight, bias,
                                                    bf16_matmul=False))
    assert out_f32.shape == (N, C_out, H, W)
    assert jnp.allclose(out_f32, ref, atol=1e-5, rtol=1e-5)

    # Default bf16-MXU fast path (intentionally looser numerics).
    out_bf16 = jax.block_until_ready(linear_1x1_conv(x, weight, bias))
    assert out_bf16.shape == (N, C_out, H, W)
    assert jnp.allclose(out_bf16, ref, atol=2e-2, rtol=2e-2)

    print("KERNEL_OK")
</pallas_src>

<mosaic_0001>
module attributes {stable_mosaic.version = 11 : i64} {
  func.func @_linear_kernel(%arg0: i32, %arg1: i32, %arg2: i32, %arg3: memref<8x4xf32, #tpu.memory_space<vmem>>, %arg4: memref<8x1xf32, #tpu.memory_space<vmem>>, %arg5: memref<1x4x256xf32, #tpu.memory_space<vmem>>, %arg6: memref<1x8x256xf32, #tpu.memory_space<vmem>>) attributes {dimension_semantics = [#tpu.dimension_semantics<parallel>, #tpu.dimension_semantics<parallel>, #tpu.dimension_semantics<arbitrary>], iteration_bounds = array<i64: 2, 1, 1>, scalar_prefetch = 0 : i64, scratch_operands = 0 : i64, tpu.core_type = #tpu.core_type<tc>, window_params = [{pipeline_mode = #tpu.pipeline_mode<synchronous>, transform_indices = @transform_0, window_bounds = array<i64: 8, 4>}, {pipeline_mode = #tpu.pipeline_mode<synchronous>, transform_indices = @transform_1, window_bounds = array<i64: 8, 1>}, {transform_indices = @transform_2, window_bounds = array<i64: 1, 4, 256>}, {transform_indices = @transform_3, window_bounds = array<i64: 1, 8, 256>}]} {
    %c0 = arith.constant 0 : index
    %c0_0 = arith.constant 0 : index
    %0 = vector.load %arg3[%c0, %c0_0] : memref<8x4xf32, #tpu.memory_space<vmem>>, vector<8x4xf32>
    %c0_1 = arith.constant 0 : index
    %c0_2 = arith.constant 0 : index
    %1 = vector.load %arg4[%c0_1, %c0_2] : memref<8x1xf32, #tpu.memory_space<vmem>>, vector<8x1xf32>
    %c0_3 = arith.constant 0 : index
    %c0_4 = arith.constant 0 : index
    %c0_5 = arith.constant 0 : index
    %2 = vector.load %arg5[%c0_3, %c0_4, %c0_5] : memref<1x4x256xf32, #tpu.memory_space<vmem>>, vector<1x4x256xf32>
    %3 = vector.shape_cast %2 : vector<1x4x256xf32> to vector<4x256xf32>
    %cst = arith.constant dense<0.000000e+00> : vector<8x256xf32>
    %4 = tpu.matmul %0, %3, %cst {dimension_numbers = #tpu.dot_dimension_numbers<[1], [0], [0], [1], [0, 0, 1, 1], [], []>, precision = #tpu.contract_precision<fp32>} : vector<8x4xf32>, vector<4x256xf32>, vector<8x256xf32> -> vector<8x256xf32>
    %5 = vector.broadcast %1 : vector<8x1xf32> to vector<8x256xf32>
    %6 = arith.addf %4, %5 : vector<8x256xf32>
    %c0_6 = arith.constant 0 : index
    %c0_7 = arith.constant 0 : index
    %c0_8 = arith.constant 0 : index
    %7 = vector.load %arg6[%c0_6, %c0_7, %c0_8] : memref<1x8x256xf32, #tpu.memory_space<vmem>>, vector<1x8x256xf32>
    %8 = vector.shape_cast %7 : vector<1x8x256xf32> to vector<8x256xf32>
    %9 = vector.shape_cast %6 : vector<8x256xf32> to vector<1x8x256xf32>
    tpu.vector_store %arg6[%c0_6, %c0_7, %c0_8], %9 {strides = array<i32>} : memref<1x8x256xf32, #tpu.memory_space<vmem>>, vector<1x8x256xf32>,
    return
  }
  func.func @transform_0(%arg0: i32, %arg1: i32, %arg2: i32) -> (i32, i32) {
    %c0_i32 = arith.constant 0 : i32
    %c0_i32_0 = arith.constant 0 : i32
    %c0_i32_1 = arith.constant 0 : i32
    return %c0_i32, %c0_i32_0 : i32, i32
  }
  func.func @transform_1(%arg0: i32, %arg1: i32, %arg2: i32) -> (i32, i32) {
    %c0_i32 = arith.constant 0 : i32
    %c0_i32_0 = arith.constant 0 : i32
    %c0_i32_1 = arith.constant 0 : i32
    return %c0_i32, %c0_i32_0 : i32, i32
  }
  func.func @transform_2(%arg0: i32, %arg1: i32, %arg2: i32) -> (i32, i32, i32) {
    %c0_i32 = arith.constant 0 : i32
    return %arg0, %arg2, %arg1 : i32, i32, i32
  }
  func.func @transform_3(%arg0: i32, %arg1: i32, %arg2: i32) -> (i32, i32, i32) {
    %c0_i32 = arith.constant 0 : i32
    %c0_i32_0 = arith.constant 0 : i32
    return %arg0, %c0_i32, %arg1 : i32, i32, i32
  }
}

module attributes {stable_mosaic.version = 11 : i64} {
  func.func @_linear_kernel(%arg0: i32, %arg1: i32, %arg2: i32, %arg3: memref<8x4xf32, #tpu.memory_space<vmem>>, %arg4: memref<8x1xf32, #tpu.memory_space<vmem>>, %arg5: memref<1x4x256xf32, #tpu.memory_space<vmem>>, %arg6: memref<1x8x256xf32, #tpu.memory_space<vmem>>) attributes {dimension_semantics = [#tpu.dimension_semantics<parallel>, #tpu.dimension_semantics<parallel>, #tpu.dimension_semantics<arbitrary>], iteration_bounds = array<i64: 2, 1, 1>, scalar_prefetch = 0 : i64, scratch_operands = 0 : i64, tpu.core_type = #tpu.core_type<tc>, window_params = [{pipeline_mode = #tpu.pipeline_mode<synchronous>, transform_indices = @transform_0, window_bounds = array<i64: 8, 4>}, {pipeline_mode = #tpu.pipeline_mode<synchronous>, transform_indices = @transform_1, window_bounds = array<i64: 8, 1>}, {transform_indices = @transform_2, window_bounds = array<i64: 1, 4, 256>}, {transform_indices = @transform_3, window_bounds = array<i64: 1, 8, 256>}]} {
    %c0 = arith.constant 0 : index
    %c0_0 = arith.constant 0 : index
    %0 = vector.load %arg3[%c0, %c0_0] : memref<8x4xf32, #tpu.memory_space<vmem>>, vector<8x4xf32>
    %c0_1 = arith.constant 0 : index
    %c0_2 = arith.constant 0 : index
    %1 = vector.load %arg4[%c0_1, %c0_2] : memref<8x1xf32, #tpu.memory_space<vmem>>, vector<8x1xf32>
    %c0_3 = arith.constant 0 : index
    %c0_4 = arith.constant 0 : index
    %c0_5 = arith.constant 0 : index
    %2 = vector.load %arg5[%c0_3, %c0_4, %c0_5] : memref<1x4x256xf32, #tpu.memory_space<vmem>>, vector<1x4x256xf32>
    %3 = vector.shape_cast %2 : vector<1x4x256xf32> to vector<4x256xf32>
    %cst = arith.constant dense<0.000000e+00> : vector<8x256xf32>
    %4 = tpu.matmul %0, %3, %cst {dimension_numbers = #tpu.dot_dimension_numbers<[1], [0], [0], [1], [0, 0, 1, 1], [], []>, precision = #tpu.contract_precision<fp32>} : vector<8x4xf32>, vector<4x256xf32>, vector<8x256xf32> -> vector<8x256xf32>
    %5 = vector.broadcast %1 : vector<8x1xf32> to vector<8x256xf32>
    %6 = arith.addf %4, %5 : vector<8x256xf32>
    %c0_6 = arith.constant 0 : index
    %c0_7 = arith.constant 0 : index
    %c0_8 = arith.constant 0 : index
    %7 = vector.load %arg6[%c0_6, %c0_7, %c0_8] : memref<1x8x256xf32, #tpu.memory_space<vmem>>, vector<1x8x256xf32>
    %8 = vector.shape_cast %7 : vector<1x8x256xf32> to vector<8x256xf32>
    %9 = vector.shape_cast %6 : vector<8x256xf32> to vector<1x8x256xf32>
    tpu.vector_store %arg6[%c0_6, %c0_7, %c0_8], %9 {strides = array<i32>} : memref<1x8x256xf32, #tpu.memory_space<vmem>>, vector<1x8x256xf32>,
    return
  }
  func.func @transform_0(%arg0: i32, %arg1: i32, %arg2: i32) -> (i32, i32) {
    %c0_i32 = arith.constant 0 : i32
    %c0_i32_0 = arith.constant 0 : i32
    %c0_i32_1 = arith.constant 0 : i32
    return %c0_i32, %c0_i32_0 : i32, i32
  }
  func.func @transform_1(%arg0: i32, %arg1: i32, %arg2: i32) -> (i32, i32) {
    %c0_i32 = arith.constant 0 : i32
    %c0_i32_0 = arith.constant 0 : i32
    %c0_i32_1 = arith.constant 0 : i32
    return %c0_i32, %c0_i32_0 : i32, i32
  }
  func.func @transform_2(%arg0: i32, %arg1: i32, %arg2: i32) -> (i32, i32, i32) {
    %c0_i32 = arith.constant 0 : i32
    return %arg0, %arg2, %arg1 : i32, i32, i32
  }
  func.func @transform_3(%arg0: i32, %arg1: i32, %arg2: i32) -> (i32, i32, i32) {
    %c0_i32 = arith.constant 0 : i32
    %c0_i32_0 = arith.constant 0 : i32
    return %arg0, %c0_i32, %arg1 : i32, i32, i32
  }
}

</mosaic_0001>

<bundles_post_ra>
// kernel: _linear_impl.1
= control target key start
LH: loop header
LB: loop body
LE: loop exit
PB: predicated region body
PF: predicated region fallthrough
CT: control target
= control target key end

     0   :  { %8 = vsyncpa [#allocation3], 0  ;;  %s1116_s0 = inlined_call_operand.vmem [shape: f32[8,4], index: 0, kind: input, shape index: {}]   ;;  %s1117_s1 = inlined_call_operand.vmem [shape: f32[8,1], index: 1, kind: input, shape index: {}]   ;;  %s1118_s2 = inlined_call_operand.vmem [shape: f32[2,4,256], index: 2, kind: input, shape index: {}]   ;;  %s1119_s3 = inlined_call_operand.hbm [shape: f32[2,8,256], index: 3, kind: output, shape index: {}]  }
   0x1   :  { %10 = vsyncpa [#allocation3 + $0x1], 0  ;;  %s998_s12 = smov 0   ;;  %s1000_s13 = smov 0  }
   0x2   :  { %s1002_s14 = smov 0   ;;  %s1004_s15 = smov 0  }
   0x3   :  { %s1006_s16 = smov 0   ;;  %s1008_s17 = smov 0  }
   0x4 LB: > { %s809_s18 = sadd.s32 4294967295, %s973_s17   ;;  %s810_s19 = sadd.s32 4294967294, %s973_s17   ;;  %s973_s17 = sphi %s1008_s17, %s16_s17   ;;  %s969_s16 = sphi %s1006_s16, %s1126_s16   ;;  %s965_s15 = sphi %s1004_s15, %s1125_s15   ;;  %s961_s14 = sphi %s1002_s14, %s1124_s14   ;;  %s957_s13 = sphi %s1000_s13, %s1123_s13   ;;  %s953_s12 = sphi %s998_s12, %s1122_s12  }
   0x5   : > { %s35_s20 = sadd.s32 1, %s969_s16  ;;  %s116_s21 = sadd.s32 1, %s961_s14 }
   0x6   : > { %p37_p0 = scmp.ge.s32.totalorder %s35_s20, 2  ;;  %p126_p1 = scmp.ne.s32.totalorder %s961_s14, %s957_s13 }
   0x7   : > { %p127_p2 = scmp.eq.s32.totalorder %s809_s18, 1  ;;  %p132_p3 = scmp.ne.s32.totalorder %s957_s13, %s953_s12 }
   0x8   : > { %s1128_s20 = smov (%p37_p0, %s35_s20), 0  ;;  %p133_p5 = scmp.eq.s32.totalorder %s810_s19, 1 }
   0x9   : > { %p1038_p4 = por %p127_p2, %p126_p1  ;;  %s111_s23 = ssub.s32 %s969_s16, %s1128_s20 }
   0xa   : > { %p813_p6 = scmp.ge.s32.totalorder %s973_s17, 1  ;;  %p114_p7 = scmp.eq.s32.totalorder %s111_s23, 0 }
   0xb   : > { %p1045_p8 = por %p133_p5, %p132_p3  ;;  %p174_p9 = scmp.lt.s32.totalorder %s973_s17, 3 }
   0xc   : > { %s1051_s25 = scalar_select %p114_p7, %s961_s14, %s116_s21  }
   0xd   : > { %p175_p10 = pnand %p813_p6, %p174_p9 }
   0xe   : > { %p207_p11 = scmp.lt.s32.totalorder (!%p175_p10), %s965_s15, 1  ;;  %v221_v0 = vld [vmem:[%s1116_s0] sm:$0xff] (!%p175_p10)  ;;  %vm231_vm0 = vcmask (!%p175_p10), 31744   ;;  %v975_v1 = vmov (!%p175_p10), 0.0   ;;  %v976_v5 = vmov (!%p175_p10), 0   ;;  %vm235_vm1 = vcmask (!%p175_p10), 1043456  }
   0xf   : > { %178 = sbr.rel (%p175_p10) target bundleno = 281 (0x119), region = 32  ;;  %306 = vmatprep.mubr.f32.mxu1 (!%p175_p10), %v975_v1  ;;  %543 = vmatprep.mubr.f32.mxu0 (!%p175_p10), %v975_v1  ;;  %v233_v2 = vsel (!%p175_p10), %vm231_vm0, %v221_v0, 0  ;;  %v222_v3 = vld [vmem:[%s1117_s1] sm:$0xff] (!%p175_p10)  ;;  %s203_s8 = sand.u32 (!%p175_p10), 1, %s957_s13  }
  0x10   : > { %v307_v4 = vand.u32 (!%p175_p10), 4294901760, %v233_v2  ;;  %893 = vset.pattern.permute.xlu0 (!%p175_p10), %v976_v5  ;;  %s814_s9 = sshll.u32 (!%p175_p10), %s203_s8, 4  ;;  %s823_s10 = sshll.u32 (!%p175_p10), %s965_s15, 8 }
  0x11   : > { %226 = vperm.xlu0 (!%p175_p10), %893, %v222_v3   ;;  %s205_s11 = scalar_lea.vmem (!%p175_p10), [#allocation2], %s814_s9  ;;  %s1069_s23 = scalar_lea.hbm (!%p175_p10), %s1119_s3, %s823_s10 }
  0x12   : > { %v308_v6 = vsub.f32 (!%p175_p10), %v233_v2, %v307_v4  ;;  %s724_s18 = sshll.u32 (!%p175_p10), %s205_s11, 4  ;;  %s708_s26 = scalar_lea.sflag (!%p175_p10), [#allocation3], %s203_s8  ;;  %s1071_s18 = int_to_ptr.vmem [resolvable:$true] %s724_s18 }
  0x13   : > { %s895_s27 = scalar_lea.vmem (!%p175_p10), %s1071_s18, 256 }
  0x14   : > { %v309_v8 = vand.u32 (!%p175_p10), 4294901760, %v308_v6  ;;  %p896_p12 = scmp.ne.s32.totalorder (!%p175_p10), %s1071_s18, %s895_s27 }
  0x16   : > { %s208_s30 = scalar_select %p207_p11, %s965_s15, 1  ;;  %v310_v12 = vsub.f32 %v308_v6, %v309_v8 }
  0x17   : > { %p897_p13 = pnand %p896_p12, %p1038_p4  ;;  %s977_s15 = smov [#allocation2]  }
  0x18   : > { %s822_s4 = sshll.u32 %s208_s30, 3  ;;  %v311_v16 = vand.u32 4294901760, %v310_v12  ;;  %s899_s28 = sshll.u32 %s977_s15, 4  ;;  %s900_s28 = int_to_ptr.vmem [resolvable:$false] %s899_s28 }
  0x19   : > { %s218_s7 = scalar_lea.vmem %s1118_s2, %s822_s4  ;;  %p898_p0 = pneg %p897_p13 }
  0x1a   : > { %v223_v7 = vld [vmem:[%s218_s7] sm:$0xff]  ;;  %s901_s29 = scalar_lea.vmem %s900_s28, 512  ;;  %p902_p1 = scmp.lt.s32.totalorder %s1071_s18, %s900_s28 }
  0x1b   : > { %v230_v9 = vcombine.high %v223_v7, %v223_v7  ;;  %v236_v10 = vsel %vm235_vm1, %v223_v7, 0  ;;  %p903_p2 = scmp.lt.s32.totalorder %s901_s29, %s895_s27 }
  0x1c   : > { %v242_v11 = vand.u32 4294901760, %v236_v10 }
  0x1d   : > { %v238_v13 = vsel %vm235_vm1, %v230_v9, 0  ;;  %p904_p3 = por %p903_p2, %p902_p1 }
  0x1e   : > { %v240_v14 = vand.u32 4294901760, %v238_v13  ;;  %v325_v15 = vsub.f32 %v236_v10, %v242_v11 }
  0x1f   : > { %p905_p5 = pnand %p904_p3, %p898_p0 }
  0x20   : > { %241 = vmatprep.subr.mxu1 %v240_v14  ;;  %478 = vmatprep.subr.mxu0 %v240_v14  ;;  %v319_v17 = vsub.f32 %v238_v13, %v240_v14  ;;  %v326_v18 = vand.u32 4294901760, %v325_v15 }
  0x21   : > { %243 = vmatpush1.msra.mxu1 %v242_v11  ;;  %480 = vmatpush1.msra.mxu0 %v242_v11 }
  0x22   : > { %312 = vmatmul.mubr.f32.vlgmr.msra.gmra.mrb[0].mxu1 %v311_v16  ;;  %547 = vmatmul.mubr.f32.vlgmr.msra.gmra.mrb[0].mxu0 %v309_v8  ;;  %v320_v19 = vand.u32 4294901760, %v319_v17  ;;  %v327_v20 = vsub.f32 %v325_v15, %v326_v18 }
  0x23   : > { %392 = vmatprep.mubr.f32.mxu1 %v975_v1  ;;  %623 = vmatprep.mubr.f32.mxu0 %v975_v1 }
  0x24   : > { %v321_v21 = vsub.f32 %v319_v17, %v320_v19  ;;  %556 = vmatprep.subr.mxu0 %v320_v19  ;;  %v328_v22 = vand.u32 4294901760, %v327_v20 }
  0x25   : > { %560 = vmatpush1.msra.mxu0 %v326_v18 }
  0x26   : > { %v322_v23 = vand.u32 4294901760, %v321_v21  ;;  %632 = vmatprep.subr.mxu0 %v240_v14 }
  0x28   : > { %323 = vmatprep.subr.mxu1 %v322_v23 }
  0x29   : > { %329 = vmatpush1.msra.mxu1 %v328_v22 }
  0x2a   : > { %394 = vmatmul.mubr.f32.vlgmr.msra.gmra.mrb[0].mxu1 %v307_v4  ;;  %625 = vmatmul.mubr.f32.vlgmr.msra.gmra.mrb[0].mxu0 %v307_v4 }
  0x2b   : > { %402 = vmatprep.subr.mxu1 %v319_v17  ;;  %468 = vmatprep.mubr.f32.mxu1 %v975_v1 }
  0x2c   : > { %405 = vmatpush1.msra.mxu1 %v325_v15  ;;  %634 = vmatpush1.msra.mxu0 %v242_v11 }
  0x2d   : > { %697 = vmatprep.mubr.f32.mxu0 %v975_v1 }
  0x32   : > { %471 = vmatmul.mubr.f32.vlgmr.msra.gmra.mrb[0].mxu1 %v308_v6  ;;  %699 = vmatmul.mubr.f32.vlgmr.msra.gmra.mrb[0].mxu0 %v307_v4 }
  0x90   : > { %v227_v24 = vpop.permute.xlu0 %226 }
 0x105   : > { %v472_v25 = vpop.f32.mrb[0].mxu1  ;;  %v700_v26 = vpop.f32.mrb[0].mxu0 }
 0x106   : > { %v824_v27 = vadd.f32 %v472_v25, %v227_v24  ;;  %v474_v28 = vpop.f32.mrb[1].mxu1  ;;  %v702_v29 = vpop.f32.mrb[1].mxu0 }
 0x107   : > { %v826_v30 = vadd.f32 %v474_v28, %v227_v24 }
 0x108   : > { %v825_v31 = vadd.f32 %v824_v27, %v700_v26 }
 0x109   : > { %v827_v32 = vadd.f32 %v826_v30, %v702_v29 }
 0x10a   : > { %705 = vst [vmem:[%s205_s11] sm:$0xff] %v825_v31 }
 0x10b   : > { %706 = vst [vmem:[%s205_s11 + $0x8] sm:$0xff] %v827_v32 }
 0x10c   : > { %908 = shalt.err (!%p905_p5)
}
 0x10d   : > { %s909_s30 = scalar_lea.hbm %s1069_s23, 256  ;;  %s913_s6 = scalar_lea.hbm %s1119_s3, 512 }
 0x10e   : > { %p910_p6 = scmp.ne.s32.totalorder %s1069_s23, %s909_s30  ;;  %p914_p10 = scmp.lt.u32.totalorder %s1069_s23, %s1119_s3 }
 0x10f   : > { %p915_p11 = scmp.lt.u32.totalorder %s913_s6, %s909_s30  ;;  %p917_p13 = scmp.lt.u32.totalorder %s909_s30, %s1069_s23 }
 0x110   : > { %p911_p7 = pnand %p910_p6, %p1038_p4 }
 0x111   : > { %p916_p12 = por %p915_p11, %p914_p10 }
 0x112   : > { %p912_p9 = pneg %p911_p7 }
 0x113   : > { %p918_p0 = por %p917_p13, %p916_p12 }
 0x115   : > { %p919_p1 = pnand %p918_p0, %p912_p9 }
 0x117   : > { %922 = shalt.err (!%p919_p1)
}
 0x118   : > { %836 = dma.vmem_to_hbm [thread:$0]  (%p1038_p4), %s1071_s18, 256, %s1069_s23, %s708_s26  }
 0x119 PF: > { %p842_p2 = scmp.ge.s32.totalorder %s973_s17, 2  ;;  %s736_s9 = sand.u32 1, %s953_s12  }
 0x11a   : > { %s737_s10 = scalar_lea.sflag [#allocation3], %s736_s9 }
 0x11b   : > { %p839_p3 = pnand %p842_p2, %p1045_p8 }
 0x11d   : > { %948 = dma.done.wait (!%p839_p3), %s737_s10, 256  }
 0x11e   : > { %950 = vsyncadd (!%p839_p3), %s737_s10, 4294967040  ;;  %s16_s17 = sadd.s32 1, %s973_s17   ;;  %s1122_s12 = smov %s957_s13 }
 0x11f   : > { %p13_p5 = scmp.ge.s32.totalorder %s16_s17, 4   ;;  %s1123_s13 = smov %s961_s14 }
 0x120   : > { %s1124_s14 = smov %s1051_s25  ;;  %s1125_s15 = smov %s969_s16 }
 0x121   : > { %s1126_s16 = smov %s1128_s20  ;;  %15 = sbr.rel (!%p13_p5) target bundleno = 4 (0x4), region = 67 }
 0x128   :  { %742 = vsyncpa [#allocation3], 1 }
 0x129   :  { %744 = vsyncpa [#allocation3 + $0x1], 1 }

// kernel: _linear_impl.1
= control target key start
LH: loop header
LB: loop body
LE: loop exit
PB: predicated region body
PF: predicated region fallthrough
CT: control target
= control target key end

     0   :  { %8 = vsyncpa [#allocation3], 0  ;;  %s1116_s0 = inlined_call_operand.vmem [shape: f32[8,4], index: 0, kind: input, shape index: {}]   ;;  %s1117_s1 = inlined_call_operand.vmem [shape: f32[8,1], index: 1, kind: input, shape index: {}]   ;;  %s1118_s2 = inlined_call_operand.vmem [shape: f32[2,4,256], index: 2, kind: input, shape index: {}]   ;;  %s1119_s3 = inlined_call_operand.hbm [shape: f32[2,8,256], index: 3, kind: output, shape index: {}]  }
   0x1   :  { %10 = vsyncpa [#allocation3 + $0x1], 0  ;;  %s998_s12 = smov 0   ;;  %s1000_s13 = smov 0  }
   0x2   :  { %s1002_s14 = smov 0   ;;  %s1004_s15 = smov 0  }
   0x3   :  { %s1006_s16 = smov 0   ;;  %s1008_s17 = smov 0  }
   0x4 LB: > { %s809_s18 = sadd.s32 4294967295, %s973_s17   ;;  %s810_s19 = sadd.s32 4294967294, %s973_s17   ;;  %s973_s17 = sphi %s1008_s17, %s16_s17   ;;  %s969_s16 = sphi %s1006_s16, %s1126_s16   ;;  %s965_s15 = sphi %s1004_s15, %s1125_s15   ;;  %s961_s14 = sphi %s1002_s14, %s1124_s14   ;;  %s957_s13 = sphi %s1000_s13, %s1123_s13   ;;  %s953_s12 = sphi %s998_s12, %s1122_s12  }
   0x5   : > { %s35_s20 = sadd.s32 1, %s969_s16  ;;  %s116_s21 = sadd.s32 1, %s961_s14 }
   0x6   : > { %p37_p0 = scmp.ge.s32.totalorder %s35_s20, 2  ;;  %p126_p1 = scmp.ne.s32.totalorder %s961_s14, %s957_s13 }
   0x7   : > { %p127_p2 = scmp.eq.s32.totalorder %s809_s18, 1  ;;  %p132_p3 = scmp.ne.s32.totalorder %s957_s13, %s953_s12 }
   0x8   : > { %s1128_s20 = smov (%p37_p0, %s35_s20), 0  ;;  %p133_p5 = scmp.eq.s32.totalorder %s810_s19, 1 }
   0x9   : > { %p1038_p4 = por %p127_p2, %p126_p1  ;;  %s111_s23 = ssub.s32 %s969_s16, %s1128_s20 }
   0xa   : > { %p813_p6 = scmp.ge.s32.totalorder %s973_s17, 1  ;;  %p114_p7 = scmp.eq.s32.totalorder %s111_s23, 0 }
   0xb   : > { %p1045_p8 = por %p133_p5, %p132_p3  ;;  %p174_p9 = scmp.lt.s32.totalorder %s973_s17, 3 }
   0xc   : > { %s1051_s25 = scalar_select %p114_p7, %s961_s14, %s116_s21  }
   0xd   : > { %p175_p10 = pnand %p813_p6, %p174_p9 }
   0xe   : > { %p207_p11 = scmp.lt.s32.totalorder (!%p175_p10), %s965_s15, 1  ;;  %v221_v0 = vld [vmem:[%s1116_s0] sm:$0xff] (!%p175_p10)  ;;  %vm231_vm0 = vcmask (!%p175_p10), 31744   ;;  %v975_v1 = vmov (!%p175_p10), 0.0   ;;  %v976_v5 = vmov (!%p175_p10), 0   ;;  %vm235_vm1 = vcmask (!%p175_p10), 1043456  }
   0xf   : > { %178 = sbr.rel (%p175_p10) target bundleno = 281 (0x119), region = 32  ;;  %306 = vmatprep.mubr.f32.mxu1 (!%p175_p10), %v975_v1  ;;  %543 = vmatprep.mubr.f32.mxu0 (!%p175_p10), %v975_v1  ;;  %v233_v2 = vsel (!%p175_p10), %vm231_vm0, %v221_v0, 0  ;;  %v222_v3 = vld [vmem:[%s1117_s1] sm:$0xff] (!%p175_p10)  ;;  %s203_s8 = sand.u32 (!%p175_p10), 1, %s957_s13  }
  0x10   : > { %v307_v4 = vand.u32 (!%p175_p10), 4294901760, %v233_v2  ;;  %893 = vset.pattern.permute.xlu0 (!%p175_p10), %v976_v5  ;;  %s814_s9 = sshll.u32 (!%p175_p10), %s203_s8, 4  ;;  %s823_s10 = sshll.u32 (!%p175_p10), %s965_s15, 8 }
  0x11   : > { %226 = vperm.xlu0 (!%p175_p10), %893, %v222_v3   ;;  %s205_s11 = scalar_lea.vmem (!%p175_p10), [#allocation2], %s814_s9  ;;  %s1069_s23 = scalar_lea.hbm (!%p175_p10), %s1119_s3, %s823_s10 }
  0x12   : > { %v308_v6 = vsub.f32 (!%p175_p10), %v233_v2, %v307_v4  ;;  %s724_s18 = sshll.u32 (!%p175_p10), %s205_s11, 4  ;;  %s708_s26 = scalar_lea.sflag (!%p175_p10), [#allocation3], %s203_s8  ;;  %s1071_s18 = int_to_ptr.vmem [resolvable:$true] %s724_s18 }
  0x13   : > { %s895_s27 = scalar_lea.vmem (!%p175_p10), %s1071_s18, 256 }
  0x14   : > { %v309_v8 = vand.u32 (!%p175_p10), 4294901760, %v308_v6  ;;  %p896_p12 = scmp.ne.s32.totalorder (!%p175_p10), %s1071_s18, %s895_s27 }
  0x16   : > { %s208_s30 = scalar_select %p207_p11, %s965_s15, 1  ;;  %v310_v12 = vsub.f32 %v308_v6, %v309_v8 }
  0x17   : > { %p897_p13 = pnand %p896_p12, %p1038_p4  ;;  %s977_s15 = smov [#allocation2]  }
  0x18   : > { %s822_s4 = sshll.u32 %s208_s30, 3  ;;  %v311_v16 = vand.u32 4294901760, %v310_v12  ;;  %s899_s28 = sshll.u32 %s977_s15, 4  ;;  %s900_s28 = int_to_ptr.vmem [resolvable:$false] %s899_s28 }
  0x19   : > { %s218_s7 = scalar_lea.vmem %s1118_s2, %s822_s4  ;;  %p898_p0 = pneg %p897_p13 }
  0x1a   : > { %v223_v7 = vld [vmem:[%s218_s7] sm:$0xff]  ;;  %s901_s29 = scalar_lea.vmem %s900_s28, 512  ;;  %p902_p1 = scmp.lt.s32.totalorder %s1071_s18, %s900_s28 }
  0x1b   : > { %v230_v9 = vcombine.high %v223_v7, %v223_v7  ;;  %v236_v10 = vsel %vm235_vm1, %v223_v7, 0  ;;  %p903_p2 = scmp.lt.s32.totalorder %s901_s29, %s895_s27 }
  0x1c   : > { %v242_v11 = vand.u32 4294901760, %v236_v10 }
  0x1d   : > { %v238_v13 = vsel %vm235_vm1, %v230_v9, 0  ;;  %p904_p3 = por %p903_p2, %p902_p1 }
  0x1e   : > { %v240_v14 = vand.u32 4294901760, %v238_v13  ;;  %v325_v15 = vsub.f32 %v236_v10, %v242_v11 }
  0x1f   : > { %p905_p5 = pnand %p904_p3, %p898_p0 }
  0x20   : > { %241 = vmatprep.subr.mxu1 %v240_v14  ;;  %478 = vmatprep.subr.mxu0 %v240_v14  ;;  %v319_v17 = vsub.f32 %v238_v13, %v240_v14  ;;  %v326_v18 = vand.u32 4294901760, %v325_v15 }
  0x21   : > { %243 = vmatpush1.msra.mxu1 %v242_v11  ;;  %480 = vmatpush1.msra.mxu0 %v242_v11 }
  0x22   : > { %312 = vmatmul.mubr.f32.vlgmr.msra.gmra.mrb[0].mxu1 %v311_v16  ;;  %547 = vmatmul.mubr.f32.vlgmr.msra.gmra.mrb[0].mxu0 %v309_v8  ;;  %v320_v19 = vand.u32 4294901760, %v319_v17  ;;  %v327_v20 = vsub.f32 %v325_v15, %v326_v18 }
  0x23   : > { %392 = vmatprep.mubr.f32.mxu1 %v975_v1  ;;  %623 = vmatprep.mubr.f32.mxu0 %v975_v1 }
  0x24   : > { %v321_v21 = vsub.f32 %v319_v17, %v320_v19  ;;  %556 = vmatprep.subr.mxu0 %v320_v19  ;;  %v328_v22 = vand.u32 4294901760, %v327_v20 }
  0x25   : > { %560 = vmatpush1.msra.mxu0 %v326_v18 }
  0x26   : > { %v322_v23 = vand.u32 4294901760, %v321_v21  ;;  %632 = vmatprep.subr.mxu0 %v240_v14 }
  0x28   : > { %323 = vmatprep.subr.mxu1 %v322_v23 }
  0x29   : > { %329 = vmatpush1.msra.mxu1 %v328_v22 }
  0x2a   : > { %394 = vmatmul.mubr.f32.vlgmr.msra.gmra.mrb[0].mxu1 %v307_v4  ;;  %625 = vmatmul.mubr.f32.vlgmr.msra.gmra.mrb[0].mxu0 %v307_v4 }
  0x2b   : > { %402 = vmatprep.subr.mxu1 %v319_v17  ;;  %468 = vmatprep.mubr.f32.mxu1 %v975_v1 }
  0x2c   : > { %405 = vmatpush1.msra.mxu1 %v325_v15  ;;  %634 = vmatpush1.msra.mxu0 %v242_v11 }
  0x2d   : > { %697 = vmatprep.mubr.f32.mxu0 %v975_v1 }
  0x32   : > { %471 = vmatmul.mubr.f32.vlgmr.msra.gmra.mrb[0].mxu1 %v308_v6  ;;  %699 = vmatmul.mubr.f32.vlgmr.msra.gmra.mrb[0].mxu0 %v307_v4 }
  0x90   : > { %v227_v24 = vpop.permute.xlu0 %226 }
 0x105   : > { %v472_v25 = vpop.f32.mrb[0].mxu1  ;;  %v700_v26 = vpop.f32.mrb[0].mxu0 }
 0x106   : > { %v824_v27 = vadd.f32 %v472_v25, %v227_v24  ;;  %v474_v28 = vpop.f32.mrb[1].mxu1  ;;  %v702_v29 = vpop.f32.mrb[1].mxu0 }
 0x107   : > { %v826_v30 = vadd.f32 %v474_v28, %v227_v24 }
 0x108   : > { %v825_v31 = vadd.f32 %v824_v27, %v700_v26 }
 0x109   : > { %v827_v32 = vadd.f32 %v826_v30, %v702_v29 }
 0x10a   : > { %705 = vst [vmem:[%s205_s11] sm:$0xff] %v825_v31 }
 0x10b   : > { %706 = vst [vmem:[%s205_s11 + $0x8] sm:$0xff] %v827_v32 }
 0x10c   : > { %908 = shalt.err (!%p905_p5)
}
 0x10d   : > { %s909_s30 = scalar_lea.hbm %s1069_s23, 256  ;;  %s913_s6 = scalar_lea.hbm %s1119_s3, 512 }
 0x10e   : > { %p910_p6 = scmp.ne.s32.totalorder %s1069_s23, %s909_s30  ;;  %p914_p10 = scmp.lt.u32.totalorder %s1069_s23, %s1119_s3 }
 0x10f   : > { %p915_p11 = scmp.lt.u32.totalorder %s913_s6, %s909_s30  ;;  %p917_p13 = scmp.lt.u32.totalorder %s909_s30, %s1069_s23 }
 0x110   : > { %p911_p7 = pnand %p910_p6, %p1038_p4 }
 0x111   : > { %p916_p12 = por %p915_p11, %p914_p10 }
 0x112   : > { %p912_p9 = pneg %p911_p7 }
 0x113   : > { %p918_p0 = por %p917_p13, %p916_p12 }
 0x115   : > { %p919_p1 = pnand %p918_p0, %p912_p9 }
 0x117   : > { %922 = shalt.err (!%p919_p1)
}
 0x118   : > { %836 = dma.vmem_to_hbm [thread:$0]  (%p1038_p4), %s1071_s18, 256, %s1069_s23, %s708_s26  }
 0x119 PF: > { %p842_p2 = scmp.ge.s32.totalorder %s973_s17, 2  ;;  %s736_s9 = sand.u32 1, %s953_s12  }
 0x11a   : > { %s737_s10 = scalar_lea.sflag [#allocation3], %s736_s9 }
 0x11b   : > { %p839_p3 = pnand %p842_p2, %p1045_p8 }
 0x11d   : > { %948 = dma.done.wait (!%p839_p3), %s737_s10, 256  }
 0x11e   : > { %950 = vsyncadd (!%p839_p3), %s737_s10, 4294967040  ;;  %s16_s17 = sadd.s32 1, %s973_s17   ;;  %s1122_s12 = smov %s957_s13 }
 0x11f   : > { %p13_p5 = scmp.ge.s32.totalorder %s16_s17, 4   ;;  %s1123_s13 = smov %s961_s14 }
 0x120   : > { %s1124_s14 = smov %s1051_s25  ;;  %s1125_s15 = smov %s969_s16 }
 0x121   : > { %s1126_s16 = smov %s1128_s20  ;;  %15 = sbr.rel (!%p13_p5) target bundleno = 4 (0x4), region = 67 }
 0x128   :  { %742 = vsyncpa [#allocation3], 1 }
 0x129   :  { %744 = vsyncpa [#allocation3 + $0x1], 1 }

</bundles_post_ra>
